<compile_context>
chip_gen: v6e
topology: v6e:2x2x1
jax: 0.10.0
libtpu: 0.0.40
codegen_flags: <defaults>
</compile_context>

<pallas_src>
from typing import NamedTuple

import jax
import jax.numpy as jnp
from jax import lax
from jax.experimental import pallas as pl
from jax.experimental.pallas import tpu as pltpu

_LANE = 128
_SUBLANE = 8

TM_MAX = 512                      # batch tile cap (weight streamed once if B <= TM_MAX)
TN_MAX = 512                      # output-feature tile cap
TK_MAX = 2048                     # max K handled as a single (un-gridded) block
VMEM_BUDGET_BYTES = 24 * 1024 * 1024   # double-buffered working-set budget (v7x-safe)
VMEM_LIMIT_BYTES = 48 * 1024 * 1024    # explicit scoped-VMEM limit for Mosaic


def _round_up(x, m):
    return ((x + m - 1) // m) * m


# ----------------------------------------------------------------------------
# Kernels
# ----------------------------------------------------------------------------
def _linear_kernel_fused(x_ref, w_ref, b_ref, o_ref):
    """Whole-K tile: (tm, Kp) . (tn, Kp)^T + bias -> (tm, tn). No scratch."""
    acc = lax.dot_general(
        x_ref[...], w_ref[...],
        dimension_numbers=(((1,), (1,)), ((), ())),   # contract both last dims
        preferred_element_type=jnp.float32)
    o_ref[...] = (acc + b_ref[...]).astype(o_ref.dtype)


def _linear_kernel_ktiled(x_ref, w_ref, b_ref, o_ref, acc_ref):
    """K-tiled fallback: accumulate (tm, tn) in f32 VMEM scratch over grid axis 2."""
    k = pl.program_id(2)
    partial = lax.dot_general(
        x_ref[...], w_ref[...],
        dimension_numbers=(((1,), (1,)), ((), ())),
        preferred_element_type=jnp.float32)

    @pl.when(k == 0)
    def _():                                   # first step: write, no zero-init pass
        acc_ref[...] = partial

    @pl.when(k > 0)
    def _():
        acc_ref[...] += partial

    @pl.when(k == pl.num_programs(2) - 1)
    def _():                                   # finalize: bias add + cast, single store
        o_ref[...] = (acc_ref[...] + b_ref[...]).astype(o_ref.dtype)


# ----------------------------------------------------------------------------
# Parameter preparation (done once, at load time)
# ----------------------------------------------------------------------------
class PreparedLinear(NamedTuple):
    weight: jax.Array       # (Np, Kp)  padded, PyTorch (out, in) layout, compute dtype
    bias: jax.Array         # (1, Np)   padded, float32
    out_features: int
    in_features: int
    tn: int
    tk: int
    single_k: bool


def prepare_linear(weight, bias, *, compute_dtype=None):
    """Pad / cast nn.Linear parameters once and pick the tiling for this layer."""
    out_features, in_features = weight.shape
    dtype = jnp.dtype(compute_dtype) if compute_dtype is not None else jnp.dtype(weight.dtype)
    itemsize = dtype.itemsize

    np0 = _round_up(out_features, _LANE)
    kp0 = _round_up(in_features, _LANE)

    def fits(tn, tk, with_acc):
        # Double-buffered input blocks + bias + double-buffered f32 output tile
        # (+ optional f32 accumulator), budgeted at the worst-case batch tile.
        byt = 2 * (TM_MAX * tk + tn * tk) * itemsize
        byt += 2 * tn * 4
        byt += 2 * TM_MAX * tn * 4
        if with_acc:
            byt += TM_MAX * tn * 4
        return byt <= VMEM_BUDGET_BYTES

    tn = min(np0, TN_MAX)
    tk = min(kp0, TK_MAX)
    single_k = (tk == kp0)
    while single_k and not fits(tn, tk, with_acc=False):
        if tn > _LANE:
            tn = max(_LANE, (tn // 2) // _LANE * _LANE)
        else:
            single_k = False
    if not single_k:
        tk = min(kp0, 1024)
        while not fits(tn, tk, with_acc=True) and tk > _LANE:
            tk = max(_LANE, (tk // 2) // _LANE * _LANE)
        while not fits(tn, tk, with_acc=True) and tn > _LANE:
            tn = max(_LANE, (tn // 2) // _LANE * _LANE)

    np_pad = _round_up(out_features, tn)
    kp_pad = _round_up(in_features, tk)

    w = weight.astype(dtype)
    if (np_pad, kp_pad) != (out_features, in_features):
        w = jnp.pad(w, ((0, np_pad - out_features), (0, kp_pad - in_features)))
    b = bias.astype(jnp.float32)
    if np_pad != out_features:
        b = jnp.pad(b, (0, np_pad - out_features))
    b = b.reshape(1, np_pad)

    return PreparedLinear(weight=w, bias=b,
                          out_features=out_features, in_features=in_features,
                          tn=tn, tk=tk, single_k=single_k)


# ----------------------------------------------------------------------------
# Forward
# ----------------------------------------------------------------------------
def simple_module_forward(x, params: PreparedLinear):
    """Equivalent of SimpleModule.forward(x) == nn.Linear(in, out)(x).

    x: (B, in_features); returns (B, out_features) in x.dtype.
    """
    B, in_features = x.shape
    if in_features != params.in_features:
        raise ValueError("in_features mismatch")

    w, b = params.weight, params.bias
    Np, Kp = w.shape
    tn, tk = params.tn, params.tk
    out_dtype = x.dtype

    # Batch tile: whole padded batch when small (weight streamed once).
    tm = min(_round_up(B, _SUBLANE), TM_MAX)
    Mp = _round_up(B, tm)

    x_c = x.astype(w.dtype)
    if (Mp, Kp) != (B, in_features):
        x_c = jnp.pad(x_c, ((0, Mp - B), (0, Kp - in_features)))

    grid_i, grid_j = Mp // tm, Np // tn

    if params.single_k:
        out_p = pl.pallas_call(
            _linear_kernel_fused,
            out_shape=jax.ShapeDtypeStruct((Mp, Np), out_dtype),
            grid_spec=pltpu.PrefetchScalarGridSpec(
                num_scalar_prefetch=0,
                grid=(grid_i, grid_j),
                in_specs=[
                    pl.BlockSpec((tm, Kp), lambda i, j: (i, 0)),   # x tile (whole K)
                    pl.BlockSpec((tn, Kp), lambda i, j: (j, 0)),   # W tile (out, in)
                    pl.BlockSpec((1, tn), lambda i, j: (0, j)),    # bias tile
                ],
                out_specs=pl.BlockSpec((tm, tn), lambda i, j: (i, j)),
            ),
            compiler_params=pltpu.CompilerParams(
                dimension_semantics=("parallel", "parallel"),
                vmem_limit_bytes=VMEM_LIMIT_BYTES),
        )(x_c, w, b)
    else:
        grid_k = Kp // tk
        out_p = pl.pallas_call(
            _linear_kernel_ktiled,
            out_shape=jax.ShapeDtypeStruct((Mp, Np), out_dtype),
            grid_spec=pltpu.PrefetchScalarGridSpec(
                num_scalar_prefetch=0,
                grid=(grid_i, grid_j, grid_k),
                in_specs=[
                    pl.BlockSpec((tm, tk), lambda i, j, k: (i, k)),
                    pl.BlockSpec((tn, tk), lambda i, j, k: (j, k)),
                    pl.BlockSpec((1, tn), lambda i, j, k: (0, j)),
                ],
                out_specs=pl.BlockSpec((tm, tn), lambda i, j, k: (i, j)),
                scratch_shapes=[pltpu.VMEM((tm, tn), jnp.float32)],
            ),
            compiler_params=pltpu.CompilerParams(
                dimension_semantics=("parallel", "parallel", "arbitrary"),
                vmem_limit_bytes=VMEM_LIMIT_BYTES),
        )(x_c, w, b)

    if (Mp, Np) != (B, params.out_features):
        out_p = out_p[:B, :params.out_features]
    return out_p


if __name__ == "__main__":
    # Small shapes consistent with SimpleModule(input_size, output_size).
    batch, input_size, output_size = 8, 32, 16

    key = jax.random.PRNGKey(0)
    kx, kw, kb = jax.random.split(key, 3)

    x = jax.random.normal(kx, (batch, input_size), dtype=jnp.float32)
    bound = 1.0 / (input_size ** 0.5)
    weight = jax.random.uniform(kw, (output_size, input_size),
                                minval=-bound, maxval=bound, dtype=jnp.float32)
    bias = jax.random.uniform(kb, (output_size,),
                              minval=-bound, maxval=bound, dtype=jnp.float32)

    y_ref = x @ weight.T + bias

    # 1) f32 operands, single-K fused path (tight check).
    params_f32 = prepare_linear(weight, bias)
    y = jax.block_until_ready(simple_module_forward(x, params_f32))
    assert y.shape == (batch, output_size)
    assert jnp.allclose(y, y_ref, atol=1e-4, rtol=1e-5)

    # 2) bf16 operands / f32 accumulate + bias (the main HBM/MXU win), looser check.
    params_bf16 = prepare_linear(weight, bias, compute_dtype=jnp.bfloat16)
    y_bf16 = jax.block_until_ready(simple_module_forward(x, params_bf16))
    assert y_bf16.dtype == jnp.float32
    assert jnp.allclose(y_bf16, y_ref, atol=5e-2, rtol=5e-2)

    # 3) Exercise the K-tiled accumulator fallback (in_features > TK_MAX).
    big_k = 2304
    kx2, kw2 = jax.random.split(kx)
    x2 = jax.random.normal(kx2, (batch, big_k), dtype=jnp.float32)
    w2 = jax.random.uniform(kw2, (output_size, big_k),
                            minval=-0.02, maxval=0.02, dtype=jnp.float32)
    params_big = prepare_linear(w2, bias)
    assert not params_big.single_k
    y2 = jax.block_until_ready(simple_module_forward(x2, params_big))
    y2_ref = x2 @ w2.T + bias
    assert jnp.allclose(y2, y2_ref, atol=1e-3, rtol=1e-4)

    print("KERNEL_OK")
</pallas_src>

<mosaic_0001>
module attributes {stable_mosaic.version = 11 : i64} {
  func.func @_linear_kernel_fused(%arg0: i32, %arg1: i32, %arg2: memref<8x128xf32, #tpu.memory_space<vmem>>, %arg3: memref<128x128xf32, #tpu.memory_space<vmem>>, %arg4: memref<1x128xf32, #tpu.memory_space<vmem>>, %arg5: memref<8x128xf32, #tpu.memory_space<vmem>>) attributes {dimension_semantics = [#tpu.dimension_semantics<parallel>, #tpu.dimension_semantics<parallel>], iteration_bounds = array<i64: 1, 1>, scalar_prefetch = 0 : i64, scratch_operands = 0 : i64, tpu.core_type = #tpu.core_type<tc>, window_params = [{transform_indices = @transform_0, window_bounds = array<i64: 8, 128>}, {transform_indices = @transform_1, window_bounds = array<i64: 128, 128>}, {transform_indices = @transform_2, window_bounds = array<i64: 1, 128>}, {transform_indices = @transform_3, window_bounds = array<i64: 8, 128>}]} {
    %c0 = arith.constant 0 : index
    %c0_0 = arith.constant 0 : index
    %0 = vector.load %arg2[%c0, %c0_0] : memref<8x128xf32, #tpu.memory_space<vmem>>, vector<8x128xf32>
    %c0_1 = arith.constant 0 : index
    %c0_2 = arith.constant 0 : index
    %1 = vector.load %arg3[%c0_1, %c0_2] : memref<128x128xf32, #tpu.memory_space<vmem>>, vector<128x128xf32>
    %cst = arith.constant dense<0.000000e+00> : vector<8x128xf32>
    %2 = tpu.matmul %0, %1, %cst {dimension_numbers = #tpu.dot_dimension_numbers<[1], [1], [0], [0], [0, 0, 1, 0], [], []>} : vector<8x128xf32>, vector<128x128xf32>, vector<8x128xf32> -> vector<8x128xf32>
    %c0_3 = arith.constant 0 : index
    %c0_4 = arith.constant 0 : index
    %3 = vector.load %arg4[%c0_3, %c0_4] : memref<1x128xf32, #tpu.memory_space<vmem>>, vector<1x128xf32>
    %4 = vector.broadcast %3 : vector<1x128xf32> to vector<8x128xf32>
    %5 = arith.addf %2, %4 : vector<8x128xf32>
    %c0_5 = arith.constant 0 : index
    %c0_6 = arith.constant 0 : index
    %6 = vector.load %arg5[%c0_5, %c0_6] : memref<8x128xf32, #tpu.memory_space<vmem>>, vector<8x128xf32>
    tpu.vector_store %arg5[%c0_5, %c0_6], %5 {strides = array<i32>} : memref<8x128xf32, #tpu.memory_space<vmem>>, vector<8x128xf32>,
    return
  }
  func.func @transform_0(%arg0: i32, %arg1: i32) -> (i32, i32) {
    %c0_i32 = arith.constant 0 : i32
    %c0_i32_0 = arith.constant 0 : i32
    return %arg0, %c0_i32 : i32, i32
  }
  func.func @transform_1(%arg0: i32, %arg1: i32) -> (i32, i32) {
    %c0_i32 = arith.constant 0 : i32
    %c0_i32_0 = arith.constant 0 : i32
    return %arg1, %c0_i32 : i32, i32
  }
  func.func @transform_2(%arg0: i32, %arg1: i32) -> (i32, i32) {
    %c0_i32 = arith.constant 0 : i32
    %c0_i32_0 = arith.constant 0 : i32
    return %c0_i32, %arg1 : i32, i32
  }
  func.func @transform_3(%arg0: i32, %arg1: i32) -> (i32, i32) {
    %c0_i32 = arith.constant 0 : i32
    return %arg0, %arg1 : i32, i32
  }
}

</mosaic_0001>

<bundles_post_ra>
// kernel: tpu_custom_call.1
= control target key start
LH: loop header
LB: loop body
LE: loop exit
PB: predicated region body
PF: predicated region fallthrough
CT: control target
= control target key end

     0   :  { %8 = vsyncpa [#allocation3], 0  ;;  %s317_s0 = inlined_call_operand.hbm [shape: f32[8,128], index: 0, kind: input, shape index: {}]   ;;  %s318_s1 = inlined_call_operand.hbm [shape: f32[128,128], index: 1, kind: input, shape index: {}]   ;;  %s319_s2 = inlined_call_operand.vmem [shape: f32[1,128], index: 2, kind: input, shape index: {}]   ;;  %s320_s3 = inlined_call_operand.hbm [shape: f32[8,128], index: 3, kind: output, shape index: {}]  }
   0x1   :  { %9 = vsyncpa [#allocation6], 0 }
   0x2   :  { %10 = vsyncpa [#allocation4], 0  ;;  %s278_s12 = smov [#allocation2]   ;;  %s279_s14 = smov [#allocation5]  }
   0x3   :  { %s17_s13 = sshll.u32 %s278_s12, 4  ;;  %s26_s15 = sshll.u32 %s279_s14, 4  ;;  %s18_s13 = int_to_ptr.vmem [resolvable:$true] %s17_s13  ;;  %s27_s15 = int_to_ptr.vmem [resolvable:$true] %s26_s15 }
   0x4   :  { %s220_s16 = scalar_lea.vmem %s18_s13, 128  ;;  %p225_p1 = scmp.lt.s32.totalorder %s18_s13, %s18_s13 }
   0x5   :  { %p221_p0 = scmp.ne.s32.totalorder %s18_s13, %s220_s16  ;;  %p226_p2 = scmp.lt.s32.totalorder %s220_s16, %s220_s16 }
   0x7   :  { %p227_p3 = por %p226_p2, %p225_p1 }
   0x9   :  { %p228_p4 = pnand %p227_p3, %p221_p0 }
   0xb   :  { %231 = shalt.err (!%p228_p4)
}
   0xc   :  { %20 = dma.hbm_to_vmem [thread:$0]  %s317_s0, 128, %s18_s13, [#allocation3]  }
   0xd   :  { %s240_s19 = scalar_lea.vmem %s27_s15, 2048  ;;  %p245_p6 = scmp.lt.s32.totalorder %s27_s15, %s27_s15 }
   0xe   :  { %p241_p5 = scmp.ne.s32.totalorder %s27_s15, %s240_s19  ;;  %p246_p7 = scmp.lt.s32.totalorder %s240_s19, %s240_s19 }
  0x10   :  { %p247_p8 = por %p246_p7, %p245_p6 }
  0x12   :  { %p248_p9 = pnand %p247_p8, %p241_p5 }
  0x14   :  { %251 = shalt.err (!%p248_p9)
}
  0x15   :  { %s280_s20 = smov 128   ;;  %s281_s21 = smov 8  }
  0x16   :  { %32 = dma.hbm_to_vmem [thread:$0]  %s318_s1, 2048, %s27_s15, [#allocation6], %s280_s20, %s280_s20, %s281_s21  }
  0x17   :  { %272 = dma.done.wait [#allocation3], 128  }
  0x18   :  { %273 = vsyncadd [#allocation3], 4294967168 }
  0x19   :  { %274 = dma.done.wait [#allocation6], 2048  }
  0x1a   :  { %275 = vsyncadd [#allocation6], 4294965248  ;;  %v282_v0 = vmov 0.0   ;;  %vm283_vm0 = vmmov 0   ;;  %v57_v1 = vld [vmem:[#allocation5 + $0x78] sm:$0xff]  ;;  %v56_v2 = vld [vmem:[#allocation5 + $0x70] sm:$0xff] }
  0x1b   :  { %170 = vmatprep.subr.mxu0 %v282_v0  ;;  %202 = vmatprep.mubr.msk.f32.mxu0 %vm283_vm0, %v282_v0  ;;  %v55_v3 = vld [vmem:[#allocation5 + $0x68] sm:$0xff]  ;;  %v54_v4 = vld [vmem:[#allocation5 + $0x60] sm:$0xff]  ;;  %v53_v5 = vld [vmem:[#allocation5 + $0x58] sm:$0xff]  ;;  %s284_s24 = smov [#allocation7]  }
  0x1c   :  { %171 = vmatpush3.xpose.msra.mxu0 %v57_v1  ;;  %v52_v6 = vld [vmem:[#allocation5 + $0x50] sm:$0xff]  ;;  %v51_v7 = vld [vmem:[#allocation5 + $0x48] sm:$0xff]  ;;  %v50_v8 = vld [vmem:[#allocation5 + $0x40] sm:$0xff]  ;;  %s142_s25 = sshll.u32 %s284_s24, 4  ;;  %s143_s25 = int_to_ptr.vmem [resolvable:$true] %s142_s25 }
  0x1d   :  { %172 = vmatprep.subr.mxu0 %v282_v0  ;;  %v49_v9 = vld [vmem:[#allocation5 + $0x38] sm:$0xff]  ;;  %v48_v10 = vld [vmem:[#allocation5 + $0x30] sm:$0xff]  ;;  %v47_v11 = vld [vmem:[#allocation5 + $0x28] sm:$0xff]  ;;  %s252_s26 = scalar_lea.vmem %s143_s25, 128  ;;  %p257_p11 = scmp.lt.s32.totalorder %s143_s25, %s143_s25 }
  0x1e   :  { %v46_v12 = vld [vmem:[#allocation5 + $0x20] sm:$0xff]  ;;  %v45_v13 = vld [vmem:[#allocation5 + $0x18] sm:$0xff]  ;;  %v44_v14 = vld [vmem:[#allocation5 + $0x10] sm:$0xff]  ;;  %p253_p10 = scmp.ne.s32.totalorder %s143_s25, %s252_s26  ;;  %p258_p12 = scmp.lt.s32.totalorder %s252_s26, %s252_s26 }
  0x1f   :  { %v43_v15 = vld [vmem:[#allocation5 + $0x8] sm:$0xff]  ;;  %v42_v16 = vld [vmem:[#allocation5] sm:$0xff]  ;;  %v41_v17 = vld [vmem:[#allocation2] sm:$0xff] }
  0x20   :  { %173 = vmatpush3.xpose.msra.mxu0 %v56_v2  ;;  %v152_v18 = vld [vmem:[%s319_s2] ss:$0 sm:$0xff]  ;;  %p259_p13 = por %p258_p12, %p257_p11 }
  0x21   :  { %174 = vmatprep.subr.mxu0 %v282_v0 }
  0x22   :  { %p260_p0 = pnand %p259_p13, %p253_p10 }
  0x24   :  { %175 = vmatpush3.xpose.msra.mxu0 %v55_v3 }
  0x25   :  { %176 = vmatprep.subr.mxu0 %v282_v0 }
  0x28   :  { %177 = vmatpush3.xpose.msra.mxu0 %v54_v4 }
  0x29   :  { %178 = vmatprep.subr.mxu0 %v282_v0 }
  0x2c   :  { %179 = vmatpush3.xpose.msra.mxu0 %v53_v5 }
  0x2d   :  { %180 = vmatprep.subr.mxu0 %v282_v0 }
  0x30   :  { %181 = vmatpush3.xpose.msra.mxu0 %v52_v6 }
  0x31   :  { %182 = vmatprep.subr.mxu0 %v282_v0 }
  0x34   :  { %183 = vmatpush3.xpose.msra.mxu0 %v51_v7 }
  0x35   :  { %184 = vmatprep.subr.mxu0 %v282_v0 }
  0x38   :  { %185 = vmatpush3.xpose.msra.mxu0 %v50_v8 }
  0x39   :  { %186 = vmatprep.subr.mxu0 %v282_v0 }
  0x3c   :  { %187 = vmatpush3.xpose.msra.mxu0 %v49_v9 }
  0x3d   :  { %188 = vmatprep.subr.mxu0 %v282_v0 }
  0x40   :  { %189 = vmatpush3.xpose.msra.mxu0 %v48_v10 }
  0x41   :  { %190 = vmatprep.subr.mxu0 %v282_v0 }
  0x44   :  { %191 = vmatpush3.xpose.msra.mxu0 %v47_v11 }
  0x45   :  { %192 = vmatprep.subr.mxu0 %v282_v0 }
  0x48   :  { %193 = vmatpush3.xpose.msra.mxu0 %v46_v12 }
  0x49   :  { %194 = vmatprep.subr.mxu0 %v282_v0 }
  0x4c   :  { %195 = vmatpush3.xpose.msra.mxu0 %v45_v13 }
  0x4d   :  { %196 = vmatprep.subr.mxu0 %v282_v0 }
  0x50   :  { %197 = vmatpush3.xpose.msra.mxu0 %v44_v14 }
  0x51   :  { %198 = vmatprep.subr.mxu0 %v282_v0 }
  0x54   :  { %199 = vmatpush3.xpose.msra.mxu0 %v43_v15 }
  0x55   :  { %200 = vmatprep.subr.mxu0 %v282_v0 }
  0x58   :  { %201 = vmatpush3.xpose.msra.mxu0 %v42_v16 }
  0x5b   :  { %203 = vmatmul.mubr.f32.vlgmr.msra.gmra.mxu0 %v41_v17 }
 0x11b   :  { %v131_v19 = vpop.f32.mrf.mxu0 }
 0x11c   :  { %v132_v20 = vadd.f32 %v152_v18, %v131_v19 }
 0x11d   :  { %v204_v21 = vpop.f32.mrf.mxu0 }
 0x11e   :  { %135 = vst [vmem:[#allocation7] sm:$0xff] %v132_v20 }
 0x11f   :  { %263 = shalt.err (!%p260_p0)
}
 0x120   :  { %145 = dma.vmem_to_hbm [thread:$0]  %s143_s25, 128, %s320_s3, [#allocation4]  }
 0x121   :  { %276 = dma.done.wait [#allocation4], 128  }
 0x122   :  { %277 = vsyncadd [#allocation4], 4294967168 }
 0x123   :  { %149 = vsyncpa [#allocation3], 1 }
 0x124   :  { %150 = vsyncpa [#allocation6], 1 }
 0x125   :  { %151 = vsyncpa [#allocation4], 1 }

</bundles_post_ra>
